<compile_context>
chip_gen: v7x
topology: tpu7x:2x2x1
jax: 0.10.0
libtpu: 0.0.40
codegen_flags: <defaults>
</compile_context>

<pallas_src>
import functools
import math

import jax
import jax.numpy as jnp
from jax import lax
from jax.experimental import pallas as pl
from jax.experimental.pallas import tpu as pltpu


def _round_up(x, m):
    return ((x + m - 1) // m) * m


def _pad2d(a, rows, cols, fill=0):
    r, c = a.shape
    if r == rows and c == cols:
        return a
    return jnp.pad(a, ((0, rows - r), (0, cols - c)), constant_values=fill)


def _arc_margin_kernel(hit_ref, x_ref, w_ref, winv_ref, lbl_ref, col_ref, o_ref, *,
                       s, cos_m, sin_m, th, mm, easy_margin, ls_eps,
                       out_features, n_col_tiles, gate_epilogue):
    # Single-K-step cosine numerator: (TB, Kp) x (TN, Kp) contracted on the last
    # dims -> (TB, TN), f32 MXU accumulation.  This q@k.T-style contraction is
    # handled natively (no XLU transpose of the weight tile).
    acc = lax.dot_general(
        x_ref[...], w_ref[...],
        dimension_numbers=(((1,), (1,)), ((), ())),
        preferred_element_type=jnp.float32)
    # Fold F.normalize(weight) here instead of materializing a normalized copy.
    cosine = acc * winv_ref[...]                       # (TB, TN) * (1, TN)

    def arcface_epilogue():
        # Clamp 1 - cos^2 at 0: identical to torch for valid inputs, avoids NaN
        # when rounding pushes |cosine| marginally above 1.
        sine = jnp.sqrt(jnp.maximum(1.0 - cosine * cosine, 0.0))
        phi = cosine * cos_m - sine * sin_m
        if easy_margin:
            phi = jnp.where(cosine > 0.0, phi, cosine)
        else:
            phi = jnp.where(cosine > th, phi, cosine - mm)
        # One-hot via preloaded GLOBAL column ids (1, TN) vs labels (TB, 1):
        # no iota, no per-element offset add.
        hit = col_ref[...] == lbl_ref[...]
        if ls_eps > 0.0:
            one_hot = (1.0 - ls_eps) * hit.astype(jnp.float32) + (ls_eps / out_features)
            out = cosine + one_hot * (phi - cosine)
        else:
            out = jnp.where(hit, phi, cosine)
        o_ref[...] = (out * s).astype(o_ref.dtype)

    if gate_epilogue:
        # Valid only for ls_eps == 0: if no label of this batch tile falls in
        # this N tile's column range, the tile reduces to a scale-and-store.
        # NOTE: program_id is read at the kernel top level (NOT inside pl.when);
        # the SMEM hit map is scalar-prefetched.
        flag = hit_ref[pl.program_id(1) * n_col_tiles + pl.program_id(0)]

        @pl.when(flag != 0)
        def _():
            arcface_epilogue()

        @pl.when(flag == 0)
        def _():
            o_ref[...] = (cosine * s).astype(o_ref.dtype)
    else:
        arcface_epilogue()


def arc_margin_product(x, weight, label, *, s=30.0, m=0.5,
                       easy_margin=False, ls_eps=0.0,
                       tb_max=512, tn_max=512,
                       compute_dtype=jnp.bfloat16):
    """ArcFace forward.

    x: (B, in_features), weight: (out_features, in_features), label: (B,) int.
    Returns (B, out_features) float32, matching the PyTorch module forward.
    """
    B, K = x.shape
    N, K2 = weight.shape
    assert K2 == K and label.shape == (B,)

    eps = 1e-12
    xf = x.astype(jnp.float32)
    wf = weight.astype(jnp.float32)

    # F.normalize(input, dim=1, eps=1e-12): fold into x (small) and cast.
    x_n = xf * lax.rsqrt(jnp.maximum(jnp.sum(xf * xf, axis=-1, keepdims=True),
                                     eps * eps))
    # F.normalize(weight, dim=1): only the per-row inverse norm is computed; the
    # raw weight goes to the MXU and the scale is applied to the f32 accumulator.
    # NOTE: in a training loop, hoist this inv-norm + the cast/pad below out of
    # the per-step code so the (N, K) weight is prepared once.
    w_inv = lax.rsqrt(jnp.maximum(jnp.sum(wf * wf, axis=-1), eps * eps))   # (N,)

    # Tiling: full K per grid step (single MXU call, no K grid axis), lane-dense
    # N tiles (default 512 -> multiple of 256 for the v6e/v7x MXU; on v5e any
    # 128-multiple is fine), sublane-dense batch tiles.
    tb_max = max(8, _round_up(int(tb_max), 8))
    tn_max = max(128, _round_up(int(tn_max), 128))
    TB = min(tb_max, _round_up(B, 8))
    TN = min(tn_max, _round_up(N, 128))
    Kp = _round_up(K, 128)
    Bp = _round_up(B, TB)
    Np = _round_up(N, TN)
    n_b, n_n = Bp // TB, Np // TN

    # Pads are skipped when shapes are already tile-aligned (no extra HBM copy).
    x_p = _pad2d(x_n.astype(compute_dtype), Bp, Kp)
    w_p = _pad2d(weight.astype(compute_dtype), Np, Kp)        # raw weight
    winv_p = _pad2d(w_inv.reshape(1, N).astype(jnp.float32), 1, Np)
    lbl_i = label.astype(jnp.int32).reshape(B, 1)
    lbl_p = _pad2d(lbl_i, Bp, 1, fill=-1)
    col_idx = jnp.arange(Np, dtype=jnp.int32).reshape(1, Np)  # global column ids

    # Per-(batch-tile, N-tile) "contains any label" map for the ls_eps == 0
    # epilogue fast path; scalar-prefetched into SMEM.
    lbl_tiles = _pad2d(lbl_i, Bp, 1, fill=-1).reshape(n_b, TB)
    lbl_tile_col = jnp.where(lbl_tiles >= 0, lbl_tiles // TN, -1)
    hit_map = jnp.any(
        lbl_tile_col[:, :, None] == jnp.arange(n_n, dtype=jnp.int32)[None, None, :],
        axis=1).astype(jnp.int32).reshape(-1)                 # (n_b * n_n,)

    gate_epilogue = (float(ls_eps) == 0.0)

    kernel = functools.partial(
        _arc_margin_kernel,
        s=float(s),
        cos_m=math.cos(m),
        sin_m=math.sin(m),
        th=math.cos(math.pi - m),
        mm=math.sin(math.pi - m) * m,
        easy_margin=bool(easy_margin),
        ls_eps=float(ls_eps),
        out_features=N,            # original (unpadded) out_features
        n_col_tiles=n_n,
        gate_epilogue=gate_epilogue,
    )

    # n outer / b inner: the (TN, Kp) weight block index is constant across the
    # inner batch axis, so the weight streams from HBM exactly once.  Both axes
    # are "parallel"; on v7x the N axis carries the megacore split.
    grid = (n_n, n_b)

    out_p = pl.pallas_call(
        kernel,
        out_shape=jax.ShapeDtypeStruct((Bp, Np), jnp.float32),
        grid_spec=pltpu.PrefetchScalarGridSpec(
            num_scalar_prefetch=1,
            grid=grid,
            in_specs=[
                # x tile: resident across the whole grid when Bp == TB.
                pl.BlockSpec((TB, Kp), lambda n, b, hm: (b, 0)),
                # raw weight tile: the dominant traffic, streamed once.
                # (On bandwidth-starved v5e, pipeline_mode=pl.Buffered(3) here
                #  can hide exposed weight DMA if profiling shows it.)
                pl.BlockSpec((TN, Kp), lambda n, b, hm: (n, 0)),
                # per-row inverse norms of the weight.
                pl.BlockSpec((1, TN), lambda n, b, hm: (0, n)),
                # labels (constant across the n axis).
                pl.BlockSpec((TB, 1), lambda n, b, hm: (b, 0)),
                # global column ids for the one-hot compare.
                pl.BlockSpec((1, TN), lambda n, b, hm: (0, n)),
            ],
            out_specs=pl.BlockSpec((TB, TN), lambda n, b, hm: (b, n)),
        ),
        compiler_params=pltpu.CompilerParams(
            dimension_semantics=("parallel", "parallel"),
            # > v5e's 16 MiB scoped default, well under v7x's 64 MiB physical.
            vmem_limit_bytes=48 * 1024 * 1024,
        ),
        cost_estimate=pl.CostEstimate(
            flops=2 * B * N * K,
            transcendentals=B * N,      # the per-element sqrt in the epilogue
            bytes_accessed=(x_p.size * x_p.dtype.itemsize
                            + w_p.size * w_p.dtype.itemsize    # streamed once
                            + winv_p.size * 4 + lbl_p.size * 4 + col_idx.size * 4
                            + Bp * Np * 4),
        ),
    )(hit_map, x_p, w_p, winv_p, lbl_p, col_idx)

    return out_p[:B, :N]


# --------------------------- pure-JAX reference ---------------------------

def _reference_cosine(x, weight):
    eps = 1e-12
    x_n = x / jnp.maximum(jnp.linalg.norm(x, axis=1, keepdims=True), eps)
    w_n = weight / jnp.maximum(jnp.linalg.norm(weight, axis=1, keepdims=True), eps)
    return jnp.dot(x_n, w_n.T, precision=lax.Precision.HIGHEST).astype(jnp.float32)


def _reference(x, weight, label, *, s, m, easy_margin, ls_eps):
    """Mirrors the PyTorch module (sqrt clamped at 0 to avoid NaN from rounding)."""
    cosine = _reference_cosine(x, weight)
    sine = jnp.sqrt(jnp.maximum(1.0 - cosine ** 2, 0.0))
    phi = cosine * math.cos(m) - sine * math.sin(m)
    if easy_margin:
        phi = jnp.where(cosine > 0, phi, cosine)
    else:
        phi = jnp.where(cosine > math.cos(math.pi - m),
                        phi, cosine - math.sin(math.pi - m) * m)
    one_hot = jax.nn.one_hot(label, weight.shape[0], dtype=jnp.float32)
    if ls_eps > 0:
        one_hot = (1 - ls_eps) * one_hot + ls_eps / weight.shape[0]
    return (one_hot * phi + (1.0 - one_hot) * cosine) * s


if __name__ == "__main__":
    key = jax.random.PRNGKey(0)

    def make_inputs(k, B, K, N):
        kx, kw, kl = jax.random.split(k, 3)
        x = jax.random.normal(kx, (B, K), dtype=jnp.float32)
        bound = math.sqrt(6.0 / (K + N))                     # xavier_uniform_
        w = jax.random.uniform(kw, (N, K), dtype=jnp.float32,
                               minval=-bound, maxval=bound)
        lbl = jax.random.randint(kl, (B,), 0, N, dtype=jnp.int32)
        return x, w, lbl

    k1, k2, k3 = jax.random.split(key, 3)

    # Case 1: f32 operands, ls_eps > 0, hard margin, multi-tile N axis.
    x1, w1, l1 = make_inputs(k1, 8, 256, 512)
    out1 = jax.block_until_ready(
        arc_margin_product(x1, w1, l1, s=30.0, m=0.5, easy_margin=False,
                           ls_eps=0.1, tn_max=256, compute_dtype=jnp.float32))
    ref1 = _reference(x1, w1, l1, s=30.0, m=0.5, easy_margin=False, ls_eps=0.1)
    assert out1.shape == (8, 512)
    err1 = float(jnp.max(jnp.abs(out1 - ref1)))
    assert err1 < 1e-2, f"case1 max abs err = {err1}"

    # Case 2: bf16 operands (default), ls_eps == 0 gated epilogue, multiple
    # batch and N tiles (exercises both the hit and no-hit tile paths).
    x2, w2, l2 = make_inputs(k2, 16, 384, 640)
    out2 = jax.block_until_ready(
        arc_margin_product(x2, w2, l2, s=30.0, m=0.5, easy_margin=False,
                           ls_eps=0.0, tb_max=8, tn_max=128))
    ref2 = _reference(x2, w2, l2, s=30.0, m=0.5, easy_margin=False, ls_eps=0.0)
    assert out2.shape == (16, 640)
    err2 = float(jnp.max(jnp.abs(out2 - ref2)))
    assert err2 < 0.2, f"case2 (bf16) max abs err = {err2}"

    # Case 3: easy margin (f32 operands).  Labels are chosen as the argmax
    # column so the cosine > 0 branch cannot flip between kernel and reference.
    x3, w3, _ = make_inputs(k3, 8, 128, 256)
    l3 = jnp.argmax(_reference_cosine(x3, w3), axis=1).astype(jnp.int32)
    out3 = jax.block_until_ready(
        arc_margin_product(x3, w3, l3, s=30.0, m=0.5, easy_margin=True,
                           ls_eps=0.0, compute_dtype=jnp.float32))
    ref3 = _reference(x3, w3, l3, s=30.0, m=0.5, easy_margin=True, ls_eps=0.0)
    assert out3.shape == (8, 256)
    err3 = float(jnp.max(jnp.abs(out3 - ref3)))
    assert err3 < 1e-2, f"case3 max abs err = {err3}"

    print("KERNEL_OK")
</pallas_src>

<mosaic_0001>
module attributes {stable_mosaic.version = 11 : i64} {
  func.func @_arc_margin_kernel(%arg0: i32, %arg1: i32, %arg2: memref<2xi32, #tpu.memory_space<smem>>, %arg3: memref<8x256xf32, #tpu.memory_space<vmem>>, %arg4: memref<256x256xf32, #tpu.memory_space<vmem>>, %arg5: memref<1x256xf32, #tpu.memory_space<vmem>>, %arg6: memref<8x1xi32, #tpu.memory_space<vmem>>, %arg7: memref<1x256xi32, #tpu.memory_space<vmem>>, %arg8: memref<8x256xf32, #tpu.memory_space<vmem>>) attributes {dimension_semantics = [#tpu.dimension_semantics<parallel>, #tpu.dimension_semantics<parallel>], iteration_bounds = array<i64: 2, 1>, scalar_prefetch = 1 : i64, scratch_operands = 0 : i64, tpu.core_type = #tpu.core_type<tc>, window_params = [{transform_indices = @transform_0, window_bounds = array<i64: 8, 256>}, {transform_indices = @transform_1, window_bounds = array<i64: 256, 256>}, {transform_indices = @transform_2, window_bounds = array<i64: 1, 256>}, {transform_indices = @transform_3, window_bounds = array<i64: 8, 1>}, {transform_indices = @transform_4, window_bounds = array<i64: 1, 256>}, {transform_indices = @transform_5, window_bounds = array<i64: 8, 256>}]} {
    %c0 = arith.constant 0 : index
    %c0_0 = arith.constant 0 : index
    %0 = vector.load %arg3[%c0, %c0_0] : memref<8x256xf32, #tpu.memory_space<vmem>>, vector<8x256xf32>
    %c0_1 = arith.constant 0 : index
    %c0_2 = arith.constant 0 : index
    %1 = vector.load %arg4[%c0_1, %c0_2] : memref<256x256xf32, #tpu.memory_space<vmem>>, vector<256x256xf32>
    %cst = arith.constant dense<0.000000e+00> : vector<8x256xf32>
    %2 = tpu.matmul %0, %1, %cst {dimension_numbers = #tpu.dot_dimension_numbers<[1], [1], [0], [0], [0, 0, 1, 0], [], []>} : vector<8x256xf32>, vector<256x256xf32>, vector<8x256xf32> -> vector<8x256xf32>
    %c0_3 = arith.constant 0 : index
    %c0_4 = arith.constant 0 : index
    %3 = vector.load %arg5[%c0_3, %c0_4] : memref<1x256xf32, #tpu.memory_space<vmem>>, vector<1x256xf32>
    %4 = vector.broadcast %3 : vector<1x256xf32> to vector<8x256xf32>
    %5 = arith.mulf %2, %4 : vector<8x256xf32>
    %6 = arith.mulf %5, %5 : vector<8x256xf32>
    %cst_5 = arith.constant 1.000000e+00 : f32
    %7 = vector.broadcast %cst_5 : f32 to vector<8x256xf32>
    %8 = arith.subf %7, %6 : vector<8x256xf32>
    %cst_6 = arith.constant 0.000000e+00 : f32
    %9 = vector.broadcast %cst_6 : f32 to vector<8x256xf32>
    %10 = arith.maximumf %8, %9 : vector<8x256xf32>
    %11 = math.sqrt %10 : vector<8x256xf32>
    %cst_7 = arith.constant 0.87758255 : f32
    %12 = vector.broadcast %cst_7 : f32 to vector<8x256xf32>
    %13 = arith.mulf %5, %12 : vector<8x256xf32>
    %cst_8 = arith.constant 0.47942555 : f32
    %14 = vector.broadcast %cst_8 : f32 to vector<8x256xf32>
    %15 = arith.mulf %11, %14 : vector<8x256xf32>
    %16 = arith.subf %13, %15 : vector<8x256xf32>
    %cst_9 = arith.constant -0.87758255 : f32
    %17 = vector.broadcast %cst_9 : f32 to vector<8x256xf32>
    %18 = arith.cmpf ogt, %5, %17 : vector<8x256xf32>
    %cst_10 = arith.constant 0.239712775 : f32
    %19 = vector.broadcast %cst_10 : f32 to vector<8x256xf32>
    %20 = arith.subf %5, %19 : vector<8x256xf32>
    %21 = arith.select %18, %16, %20 : vector<8x256xi1>, vector<8x256xf32>
    %c0_11 = arith.constant 0 : index
    %c0_12 = arith.constant 0 : index
    %22 = vector.load %arg7[%c0_11, %c0_12] : memref<1x256xi32, #tpu.memory_space<vmem>>, vector<1x256xi32>
    %c0_13 = arith.constant 0 : index
    %c0_14 = arith.constant 0 : index
    %23 = vector.load %arg6[%c0_13, %c0_14] : memref<8x1xi32, #tpu.memory_space<vmem>>, vector<8x1xi32>
    %24 = vector.broadcast %22 : vector<1x256xi32> to vector<8x256xi32>
    %25 = vector.broadcast %23 : vector<8x1xi32> to vector<8x256xi32>
    %26 = arith.cmpi eq, %24, %25 : vector<8x256xi32>
    %27 = arith.extui %26 : vector<8x256xi1> to vector<8x256xi32>
    %28 = arith.sitofp %27 : vector<8x256xi32> to vector<8x256xf32>
    %cst_15 = arith.constant 0.899999976 : f32
    %29 = vector.broadcast %cst_15 : f32 to vector<8x256xf32>
    %30 = arith.mulf %29, %28 : vector<8x256xf32>
    %cst_16 = arith.constant 1.95312503E-4 : f32
    %31 = vector.broadcast %cst_16 : f32 to vector<8x256xf32>
    %32 = arith.addf %30, %31 : vector<8x256xf32>
    %33 = arith.subf %21, %5 : vector<8x256xf32>
    %34 = arith.mulf %32, %33 : vector<8x256xf32>
    %35 = arith.addf %5, %34 : vector<8x256xf32>
    %cst_17 = arith.constant 3.000000e+01 : f32
    %36 = vector.broadcast %cst_17 : f32 to vector<8x256xf32>
    %37 = arith.mulf %35, %36 : vector<8x256xf32>
    %c0_18 = arith.constant 0 : index
    %c0_19 = arith.constant 0 : index
    %38 = vector.load %arg8[%c0_18, %c0_19] : memref<8x256xf32, #tpu.memory_space<vmem>>, vector<8x256xf32>
    tpu.vector_store %arg8[%c0_18, %c0_19], %37 {strides = array<i32>} : memref<8x256xf32, #tpu.memory_space<vmem>>, vector<8x256xf32>,
    return
  }
  func.func @transform_0(%arg0: i32, %arg1: i32, %arg2: memref<2xi32, #tpu.memory_space<smem>>) -> (i32, i32) {
    %c0_i32 = arith.constant 0 : i32
    %c0_i32_0 = arith.constant 0 : i32
    return %arg1, %c0_i32 : i32, i32
  }
  func.func @transform_1(%arg0: i32, %arg1: i32, %arg2: memref<2xi32, #tpu.memory_space<smem>>) -> (i32, i32) {
    %c0_i32 = arith.constant 0 : i32
    %c0_i32_0 = arith.constant 0 : i32
    return %arg0, %c0_i32 : i32, i32
  }
  func.func @transform_2(%arg0: i32, %arg1: i32, %arg2: memref<2xi32, #tpu.memory_space<smem>>) -> (i32, i32) {
    %c0_i32 = arith.constant 0 : i32
    %c0_i32_0 = arith.constant 0 : i32
    return %c0_i32, %arg0 : i32, i32
  }
  func.func @transform_3(%arg0: i32, %arg1: i32, %arg2: memref<2xi32, #tpu.memory_space<smem>>) -> (i32, i32) {
    %c0_i32 = arith.constant 0 : i32
    %c0_i32_0 = arith.constant 0 : i32
    return %arg1, %c0_i32 : i32, i32
  }
  func.func @transform_4(%arg0: i32, %arg1: i32, %arg2: memref<2xi32, #tpu.memory_space<smem>>) -> (i32, i32) {
    %c0_i32 = arith.constant 0 : i32
    %c0_i32_0 = arith.constant 0 : i32
    return %c0_i32, %arg0 : i32, i32
  }
  func.func @transform_5(%arg0: i32, %arg1: i32, %arg2: memref<2xi32, #tpu.memory_space<smem>>) -> (i32, i32) {
    %c0_i32 = arith.constant 0 : i32
    return %arg1, %arg0 : i32, i32
  }
}

</mosaic_0001>

<bundles_post_ra>
// kernel: tpu_custom_call.1
= control target key start
LH: loop header
LB: loop body
LE: loop exit
PB: predicated region body
PF: predicated region fallthrough
CT: control target
= control target key end

     0   :  { %s1381_s0 = inlined_call_operand.vmem [shape: s32[2], index: 0, kind: input, shape index: {}]   ;;  %s1382_s1 = inlined_call_operand.hbm [shape: f32[8,256], index: 1, kind: input, shape index: {}]   ;;  %s1383_s2 = inlined_call_operand.hbm [shape: f32[512,256], index: 2, kind: input, shape index: {}]   ;;  %s1384_s3 = inlined_call_operand.vmem [shape: f32[1,512], index: 3, kind: input, shape index: {}]   ;;  %s1385_s4 = inlined_call_operand.vmem [shape: s32[8,1], index: 4, kind: input, shape index: {}]   ;;  %s1386_s5 = inlined_call_operand.vmem [shape: s32[1,512], index: 5, kind: input, shape index: {}]   ;;  %s1387_s6 = inlined_call_operand.hbm [shape: f32[8,512], index: 6, kind: output, shape index: {}]  }
   0x1   :  { %s11_s23 = sshll.u32 %s1381_s0, 4  ;;  %s12_s23 = int_to_ptr.vmem [resolvable:$true] %s11_s23 }
   0x2   :  { %s879_s24 = scalar_lea.vmem %s12_s23, 16  ;;  %p884_p1 = scmp.lt.s32.totalorder %s12_s23, %s12_s23 }
   0x3   :  { %p880_p0 = scmp.ne.s32.totalorder %s12_s23, %s879_s24  ;;  %p885_p2 = scmp.lt.s32.totalorder %s879_s24, %s879_s24 }
   0x5   :  { %p886_p3 = por %p885_p2, %p884_p1 }
   0x7   :  { %p887_p4 = pnand %p886_p3, %p880_p0 }
   0x9   :  { %890 = shalt.err (!%p887_p4)  }
   0xa   :  { %s1039_s25 = smov [#allocation3]  }
   0xb   :  { %14 = dma.vmem_to_smem %s12_s23, 16, %s1039_s25, [#allocation2] }
   0xc   :  { %1001 = dma.done.wait [#allocation2], 16 }
   0xd   :  { %1002 = vsyncadd [#allocation2], 4294967280 }
   0xe   :  { %16 = sfence }
   0xf   :  { %17 = vsyncpa [#allocation5], 0 }
  0x10   :  { %18 = vsyncpa [#allocation8], 0 }
  0x11   :  { %20 = vsyncpa [#allocation8 + $0x1], 0 }
  0x12   :  { %21 = vsyncpa [#allocation6], 0 }
  0x13   :  { %23 = vsyncpa [#allocation6 + $0x1], 0  ;;  %s1085_s26 = smov 0   ;;  %s1087_s0 = smov 0  }
  0x14   :  { %s1089_s27 = smov 0   ;;  %s1091_s28 = smov 0  }
  0x15   :  { %s1093_s29 = smov 0   ;;  %s1095_s30 = smov 0  }
  0x16 LB: > { %s704_s7 = sadd.s32 4294967295, %s1037_s30   ;;  %s705_s8 = sadd.s32 4294967294, %s1037_s30   ;;  %s1037_s30 = sphi %s1095_s30, %s29_s30   ;;  %s1033_s29 = sphi %s1093_s29, %s1416_s29   ;;  %s1029_s28 = sphi %s1091_s28, %s1415_s28   ;;  %s1025_s27 = sphi %s1089_s27, %s1414_s27   ;;  %s1021_s0 = sphi %s1087_s0, %s1413_s0   ;;  %s1017_s26 = sphi %s1085_s26, %s1412_s26  }
  0x17   : > { %p81_p5 = scmp.ne.s32.totalorder %s1025_s27, %s1021_s0  ;;  %p82_p6 = scmp.eq.s32.totalorder %s1037_s30, 0 }
  0x18   : > { %p87_p7 = scmp.ne.s32.totalorder %s1021_s0, %s1017_s26  ;;  %p1123_p8 = scmp.eq.s32.totalorder %s704_s7, 0 }
  0x19   : > { %p191_p9 = scmp.eq.s32.totalorder %s704_s7, 1  ;;  %p1127_p10 = por %p82_p6, %p81_p5 }
  0x1a   : > { %s1394_s10 = scalar_select %p1123_p8, 1, 0 }
  0x1b   : > { %p197_p11 = scmp.eq.s32.totalorder %s705_s8, 1  ;;  %p1133_p12 = por %p1123_p8, %p87_p7 }
  0x1c   : > { %p1137_p13 = por %p191_p9, %p81_p5  ;;  %p706_p1 = scmp.ge.s32.totalorder %s1037_s30, 1 }
  0x1d   : > { %s1396_s12 = scalar_select %p1133_p12, 1, 0 }
  0x1e   : > { %s1397_s13 = scalar_select %p1137_p13, 1, 0 }
  0x1f   : > { %p1141_p0 = por %p197_p11, %p87_p7  ;;  %p204_p2 = scmp.lt.s32.totalorder %s1037_s30, 3 }
  0x20   : > { %s1040_s16 = smov [#allocation4]   ;;  %p817_p6 = scmp.lt.s32.totalorder %s1037_s30, 2 }
  0x21   : > { %s1398_s14 = scalar_select %p1141_p0, 1, 0 }
  0x22   : > { %p1148_p4 = pnand %p706_p1, %p204_p2  ;;  %s220_s17 = sshll.u32 %s1040_s16, 4  ;;  %s221_s17 = int_to_ptr.vmem [resolvable:$true] %s220_s17 }
  0x23   : > { %p1157_p9 = pnand %p817_p6, %p1127_p10  ;;  %s41_s20 = sadd.s32 1, %s1033_s29 }
  0x24   : > { %s1399_s15 = scalar_select %p1148_p4, 1, 0 }
  0x25   : > { %p804_p5 = pneg %p1148_p4  ;;  %p1168_p11 = scmp.ge.s32.totalorder %s41_s20, 2 }
  0x26   : > { %s1400_s18 = scalar_select %p1157_p9, 1, 0 }
  0x27   : > { %p1163_p7 = pnand %p804_p5, %p1123_p8  ;;  %s238_s22 = sand.u32 1, %s1025_s27  }
  0x28   : > { %s1402_s21 = scalar_select %p1168_p11, 1, 0 }
  0x29   : > { %s891_s25 = scalar_lea.hbm %s1382_s1, 256  ;;  %p893_p1 = pneg %p1163_p7 }
  0x2a   : > { %p892_p10 = scmp.ne.s32.totalorder %s1382_s1, %s891_s25  ;;  %p898_p5 = scmp.lt.u32.totalorder %s891_s25, %s1382_s1 }
  0x2c   : > { %p894_p2 = pnand %p893_p1, %p892_p10 }
  0x2e   : > { %p895_p6 = pneg %p894_p2 }
  0x30   : > { %p900_p3 = pnand %p898_p5, %p895_p6 }
  0x32   : > { %903 = shalt.err (!%p900_p3)
}
  0x33   : > { %s904_s9 = scalar_lea.vmem %s221_s17, 256  ;;  %p912_p8 = scmp.lt.s32.totalorder %s221_s17, %s221_s17 }
  0x34   : > { %p905_p0 = scmp.ne.s32.totalorder %s221_s17, %s904_s9  ;;  %p913_p4 = scmp.lt.s32.totalorder %s904_s9, %s904_s9 }
  0x36   : > { %p907_p13 = pnand %p905_p0, %p893_p1  ;;  %p914_p9 = por %p913_p4, %p912_p8 }
  0x38   : > { %p908_p12 = pneg %p907_p13 }
  0x3a   : > { %p915_p11 = pnand %p914_p9, %p908_p12 }
  0x3c   : > { %918 = shalt.err (!%p915_p11)
}
  0x3d   : > { %807 = dma.hbm_to_vmem [thread:$0]  (!%p1163_p7), %s1382_s1, 256, %s221_s17, [#allocation5]  }
  0x3e   : > { %p1403_p0 = scmp.ne.s32.totalorder %s1402_s21, 0  ;;  %s710_s9 = sshll.u32 %s238_s22, 9 }
  0x3f   : > { %s730_s7 = sshll.u32 %s1033_s29, 13  ;;  %s242_s16 = scalar_lea.vmem [#allocation7], %s710_s9 }
  0x40   : > { %s1418_s20 = smov (%p1403_p0, %s41_s20), 0  ;;  %s1199_s11 = scalar_lea.hbm %s1383_s2, %s730_s7 }
  0x41   : > { %s71_s25 = ssub.s32 %s1033_s29, %s1418_s20  ;;  %s250_s23 = sshll.u32 %s242_s16, 4  ;;  %s1206_s23 = int_to_ptr.vmem [resolvable:$true] %s250_s23 }
  0x42   : > { %p72_p8 = scmp.eq.s32.totalorder %s71_s25, 0  ;;  %s1404_s17 = sadd.s32 1, %s1025_s27 }
  0x43   : > { %s1208_s24 = scalar_lea.sflag [#allocation8], %s238_s22  ;;  %s919_s25 = scalar_lea.hbm %s1199_s11, 8192 }
  0x44   : > { %s1204_s21 = scalar_select %p72_p8, %s1025_s27, %s1404_s17  }
  0x45   : > { %p920_p12 = scmp.ne.s32.totalorder %s1199_s11, %s919_s25  ;;  %p1405_p13 = scmp.ne.s32.totalorder %s1400_s18, 0 }
  0x46   : > { %s924_s9 = scalar_lea.hbm %s1383_s2, 16384  ;;  %p925_p7 = scmp.lt.u32.totalorder %s1199_s11, %s1383_s2 }
  0x47   : > { %p921_p3 = pneg %p1405_p13  ;;  %p926_p11 = scmp.lt.u32.totalorder %s924_s9, %s919_s25 }
  0x48   : > { %p928_p1 = scmp.lt.u32.totalorder %s919_s25, %s1199_s11 }
  0x49   : > { %p922_p4 = pnand %p921_p3, %p920_p12  ;;  %p927_p10 = por %p926_p11, %p925_p7 }
  0x4b   : > { %p923_p9 = pneg %p922_p4  ;;  %p929_p2 = por %p928_p1, %p927_p10 }
  0x4d   : > { %p930_p6 = pnand %p929_p2, %p923_p9 }
  0x4f   : > { %933 = shalt.err (!%p930_p6)
}
  0x50   : > { %s934_s22 = scalar_lea.vmem %s1206_s23, 8192  ;;  %s1041_s17 = smov [#allocation7]  }
  0x51   : > { %p935_p5 = scmp.ne.s32.totalorder %s1206_s23, %s934_s22  ;;  %s939_s7 = sshll.u32 %s1041_s17, 4  ;;  %s940_s7 = int_to_ptr.vmem [resolvable:$false] %s939_s7 }
  0x52   : > { %s941_s19 = scalar_lea.vmem %s940_s7, 16384  ;;  %p942_p12 = scmp.lt.s32.totalorder %s1206_s23, %s940_s7 }
  0x53   : > { %p937_p0 = pnand %p935_p5, %p921_p3  ;;  %p943_p4 = scmp.lt.s32.totalorder %s941_s19, %s934_s22 }
  0x55   : > { %p938_p8 = pneg %p937_p0  ;;  %p944_p7 = por %p943_p4, %p942_p12 }
  0x57   : > { %p945_p11 = pnand %p944_p7, %p938_p8 }
  0x59   : > { %948 = shalt.err (!%p945_p11)
}
  0x5a   : > { %s1042_s25 = smov 256   ;;  %s1043_s9 = smov 16  }
  0x5b   : > { %811 = dma.hbm_to_vmem [thread:$0]  (!%p1405_p13), %s1199_s11, 8192, %s1206_s23, %s1208_s24, %s1042_s25, %s1042_s25, %s1043_s9  }
  0x5c   : > { %p1406_p3 = scmp.ne.s32.totalorder %s1399_s15, 0 }
  0x5d   : > { %p1407_p9 = scmp.ne.s32.totalorder (!%p1406_p3), %s1394_s10, 0 }
  0x5e   : > { %278 = sbr.rel (%p1406_p3) target bundleno = 500 (0x1f4), region = 40 }
  0x65   : > { %1004 = dma.done.wait (%p1407_p9), [#allocation5], 256  }
  0x66   : > { %1006 = vsyncadd (%p1407_p9), [#allocation5], 4294967040  ;;  %s1243_s8 = sand.u32 1, %s1021_s0   ;;  %p1408_p13 = scmp.ne.s32.totalorder %s1396_s12, 0 }
  0x67   : > { %s716_s16 = sshll.u32 %s1243_s8, 9  ;;  %s285_s22 = scalar_lea.sflag [#allocation8], %s1243_s8 }
  0x68   : > { %s1247_s17 = scalar_lea.vmem [#allocation7], %s716_s16 }
  0x69   : > { %1008 = dma.done.wait (%p1408_p13), %s285_s22, 8192  }
  0x6a   : > { %1010 = vsyncadd (%p1408_p13), %s285_s22, 4294959104  ;;  %v346_v0 = vld [vmem:[%s1247_s17 + $0x8] sm:$0xff]  ;;  %v348_v1 = vld [vmem:[%s1247_s17 + $0x18] sm:$0xff]  ;;  %v1044_v9 = vmov 0   ;;  %s718_s15 = sshll.u32 %s1029_s28, 1  ;;  %s717_s25 = sshll.u32 %s1243_s8, 4 }
  0x6b   : > { %v345_v2 = vld [vmem:[%s1247_s17] sm:$0xff]  ;;  %v732_v3 = vpack.c.bf16 %v348_v1, %v346_v0  ;;  %v347_v4 = vld [vmem:[%s1247_s17 + $0x10] sm:$0xff]  ;;  %v350_v5 = vld [vmem:[%s1247_s17 + $0x28] sm:$0xff]  ;;  %874 = vset.pattern.permute.xlu0 %v1044_v9  ;;  %p329_p10 = scmp.lt.s32.totalorder %s718_s15, 3  ;;  %s731_s9 = sshll.u32 %s1029_s28, 8 }
  0x6c   : > { %v352_v6 = vld [vmem:[%s1247_s17 + $0x38] sm:$0xff]  ;;  %v734_v7 = vpack.c.bf16 %v347_v4, %v345_v2  ;;  %v349_v10 = vld [vmem:[%s1247_s17 + $0x20] sm:$0xff]  ;;  %v351_v11 = vld [vmem:[%s1247_s17 + $0x30] sm:$0xff]  ;;  %s326_s16 = scalar_lea.vmem [#allocation9], %s717_s25  ;;  %s1332_s12 = scalar_lea.hbm %s1387_s6, %s731_s9 }
  0x6d   : > { %v736_v8 = vpack.c.bf16 %v352_v6, %v350_v5  ;;  %733 = vmatprep.subr.bf16.mxu0 %v732_v3  ;;  %v354_v12 = vld [vmem:[%s1247_s17 + $0x48] sm:$0xff]  ;;  %v356_v13 = vld [vmem:[%s1247_s17 + $0x58] sm:$0xff]  ;;  %v738_v14 = vpack.c.bf16 %v351_v11, %v349_v10  ;;  %v353_v16 = vld [vmem:[%s1247_s17 + $0x40] sm:$0xff]  ;;  %s1420_s15 = smov (!%p329_p10, %s718_s15), 3  ;;  %s576_s22 = sshll.u32 %s326_s16, 4  ;;  %s1334_s22 = int_to_ptr.vmem [resolvable:$true] %s576_s22 }
  0x6e   : > { %735 = vmatpush1.bf16.xpose.msra.mxu0 %v734_v7  ;;  %v740_v15 = vpack.c.bf16 %v356_v13, %v354_v12  ;;  %v355_v17 = vld [vmem:[%s1247_s17 + $0x50] sm:$0xff]  ;;  %v358_v18 = vld [vmem:[%s1247_s17 + $0x68] sm:$0xff]  ;;  %v360_v19 = vld [vmem:[%s1247_s17 + $0x78] sm:$0xff]  ;;  %s331_s23 = scalar_lea.vmem %s1384_s3, %s1420_s15  ;;  %s340_s19 = scalar_lea.vmem %s1386_s5, %s1420_s15 }
  0x6f   : > { %737 = vmatprep.subr.bf16.mxu0 %v736_v8  ;;  %v742_v20 = vpack.c.bf16 %v355_v17, %v353_v16  ;;  %v744_v21 = vpack.c.bf16 %v360_v19, %v358_v18  ;;  %v357_v22 = vld [vmem:[%s1247_s17 + $0x60] sm:$0xff]  ;;  %v359_v23 = vld [vmem:[%s1247_s17 + $0x70] sm:$0xff]  ;;  %v344_v24 = vld [vmem:[#allocation4 + $0x8] sm:$0xff]  ;;  %s560_s15 = scalar_lea.sflag [#allocation6], %s1243_s8  ;;  %s949_s18 = scalar_lea.vmem %s1334_s22, 256 }
  0x70   : > { %v362_v25 = vld [vmem:[%s1247_s17 + $0x88] sm:$0xff]  ;;  %v364_v26 = vld [vmem:[%s1247_s17 + $0x98] sm:$0xff]  ;;  %473 = vmatprep.mubr.f32.mxu0 %v344_v24  ;;  %v527_v27 = vld [vmem:[%s1385_s4] sm:$0xff]  ;;  %v746_v28 = vpack.c.bf16 %v359_v23, %v357_v22  ;;  %p950_p1 = scmp.ne.s32.totalorder %s1334_s22, %s949_s18  ;;  %p1409_p2 = scmp.ne.s32.totalorder %s1397_s13, 0 }
  0x71   : > { %537 = vperm.xlu0 %874, %v527_v27   ;;  %v748_v29 = vpack.c.bf16 %v364_v26, %v362_v25  ;;  %v361_v30 = vld [vmem:[%s1247_s17 + $0x80] sm:$0xff]  ;;  %v363_v31 = vld [vmem:[%s1247_s17 + $0x90] sm:$0xff]  ;;  %v366_v32 = vld [vmem:[%s1247_s17 + $0xa8] sm:$0xff]  ;;  %s1046_s28 = smov [#allocation9]  }
  0x72   : > { %v368_v33 = vld [vmem:[%s1247_s17 + $0xb8] sm:$0xff]  ;;  %v750_v34 = vpack.c.bf16 %v363_v31, %v361_v30  ;;  %v365_v36 = vld [vmem:[%s1247_s17 + $0xa0] sm:$0xff]  ;;  %v367_v37 = vld [vmem:[%s1247_s17 + $0xb0] sm:$0xff]  ;;  %p951_p6 = pnand %p950_p1, %p1409_p2  ;;  %s953_s11 = sshll.u32 %s1046_s28, 4  ;;  %s954_s11 = int_to_ptr.vmem [resolvable:$false] %s953_s11 }
  0x73   : > { %v752_v35 = vpack.c.bf16 %v368_v33, %v366_v32  ;;  %v370_v38 = vld [vmem:[%s1247_s17 + $0xc8] sm:$0xff]  ;;  %v372_v39 = vld [vmem:[%s1247_s17 + $0xd8] sm:$0xff]  ;;  %v754_v40 = vpack.c.bf16 %v367_v37, %v365_v36  ;;  %v369_v42 = vld [vmem:[%s1247_s17 + $0xc0] sm:$0xff]  ;;  %v482_v36 = vlaneseq  ;;  %p956_p0 = scmp.lt.s32.totalorder %s1334_s22, %s954_s11 }
  0x74   : > { %v756_v41 = vpack.c.bf16 %v372_v39, %v370_v38  ;;  %v371_v43 = vld [vmem:[%s1247_s17 + $0xd0] sm:$0xff]  ;;  %v374_v44 = vld [vmem:[%s1247_s17 + $0xe8] sm:$0xff]  ;;  %v376_v45 = vld [vmem:[%s1247_s17 + $0xf8] sm:$0xff]  ;;  %p952_p5 = pneg %p951_p6 }
  0x75   : > { %v758_v46 = vpack.c.bf16 %v371_v43, %v369_v42  ;;  %v760_v47 = vpack.c.bf16 %v376_v45, %v374_v44  ;;  %v373_v48 = vld [vmem:[%s1247_s17 + $0xe0] sm:$0xff]  ;;  %v375_v49 = vld [vmem:[%s1247_s17 + $0xf0] sm:$0xff]  ;;  %v378_v50 = vld [vmem:[%s1247_s17 + $0x108] sm:$0xff]  ;;  %v483_v37 = vshrl.u32 %v482_v36, 7 }
  0x76   : > { %739 = vmatpush1.bf16.xpose.msra.mxu0 %v738_v14  ;;  %v380_v51 = vld [vmem:[%s1247_s17 + $0x118] sm:$0xff]  ;;  %v762_v52 = vpack.c.bf16 %v375_v49, %v373_v48  ;;  %v377_v54 = vld [vmem:[%s1247_s17 + $0x100] sm:$0xff]  ;;  %v379_v55 = vld [vmem:[%s1247_s17 + $0x110] sm:$0xff] }
  0x77   : > { %741 = vmatprep.subr.bf16.mxu0 %v740_v15  ;;  %v764_v53 = vpack.c.bf16 %v380_v51, %v378_v50  ;;  %v382_v56 = vld [vmem:[%s1247_s17 + $0x128] sm:$0xff]  ;;  %v384_v57 = vld [vmem:[%s1247_s17 + $0x138] sm:$0xff]  ;;  %v766_v58 = vpack.c.bf16 %v379_v55, %v377_v54  ;;  %v381_v60 = vld [vmem:[%s1247_s17 + $0x120] sm:$0xff]  ;;  %v484_v38 = vsub.s32 0, %v483_v37 }
  0x78   : > { %v768_v59 = vpack.c.bf16 %v384_v57, %v382_v56  ;;  %v383_v61 = vld [vmem:[%s1247_s17 + $0x130] sm:$0xff]  ;;  %v386_v62 = vld [vmem:[%s1247_s17 + $0x148] sm:$0xff]  ;;  %v388_v63 = vld [vmem:[%s1247_s17 + $0x158] sm:$0xff]  ;;  %v1045_v57 = vmov 0.0  }
  0x79   : > { %v770_v0 = vpack.c.bf16 %v383_v61, %v381_v60  ;;  %v772_v1 = vpack.c.bf16 %v388_v63, %v386_v62  ;;  %v385_v2 = vld [vmem:[%s1247_s17 + $0x140] sm:$0xff]  ;;  %v387_v3 = vld [vmem:[%s1247_s17 + $0x150] sm:$0xff]  ;;  %v390_v4 = vld [vmem:[%s1247_s17 + $0x168] sm:$0xff] }
  0x7a   : > { %v392_v5 = vld [vmem:[%s1247_s17 + $0x178] sm:$0xff]  ;;  %v774_v6 = vpack.c.bf16 %v387_v3, %v385_v2  ;;  %v389_v8 = vld [vmem:[%s1247_s17 + $0x160] sm:$0xff]  ;;  %v391_v9 = vld [vmem:[%s1247_s17 + $0x170] sm:$0xff] }
  0x7b   : > { %v776_v7 = vpack.c.bf16 %v392_v5, %v390_v4  ;;  %v394_v10 = vld [vmem:[%s1247_s17 + $0x188] sm:$0xff]  ;;  %v396_v11 = vld [vmem:[%s1247_s17 + $0x198] sm:$0xff]  ;;  %v778_v12 = vpack.c.bf16 %v391_v9, %v389_v8  ;;  %v393_v14 = vld [vmem:[%s1247_s17 + $0x180] sm:$0xff] }
  0x7c   : > { %v780_v13 = vpack.c.bf16 %v396_v11, %v394_v10  ;;  %v395_v15 = vld [vmem:[%s1247_s17 + $0x190] sm:$0xff]  ;;  %v398_v16 = vld [vmem:[%s1247_s17 + $0x1a8] sm:$0xff]  ;;  %v400_v17 = vld [vmem:[%s1247_s17 + $0x1b8] sm:$0xff] }
  0x7d   : > { %v782_v18 = vpack.c.bf16 %v395_v15, %v393_v14  ;;  %v784_v19 = vpack.c.bf16 %v400_v17, %v398_v16  ;;  %v402_v22 = vld [vmem:[%s1247_s17 + $0x1c8] sm:$0xff]  ;;  %v404_v23 = vld [vmem:[%s1247_s17 + $0x1d8] sm:$0xff]  ;;  %v401_v26 = vld [vmem:[%s1247_s17 + $0x1c0] sm:$0xff] }
  0x7e   : > { %743 = vmatpush1.bf16.xpose.msra.mxu0 %v742_v20  ;;  %v397_v20 = vld [vmem:[%s1247_s17 + $0x1a0] sm:$0xff]  ;;  %v788_v25 = vpack.c.bf16 %v404_v23, %v402_v22  ;;  %v403_v27 = vld [vmem:[%s1247_s17 + $0x1d0] sm:$0xff] }
  0x7f   : > { %745 = vmatprep.subr.bf16.mxu0 %v744_v21  ;;  %v399_v21 = vld [vmem:[%s1247_s17 + $0x1b0] sm:$0xff]  ;;  %v790_v30 = vpack.c.bf16 %v403_v27, %v401_v26  ;;  %v405_v32 = vld [vmem:[%s1247_s17 + $0x1e0] sm:$0xff] }
  0x80   : > { %v786_v24 = vpack.c.bf16 %v399_v21, %v397_v20  ;;  %v407_v33 = vld [vmem:[%s1247_s17 + $0x1f0] sm:$0xff] }
  0x81   : > { %v480_v39 = vld [vmem:[%s331_s23] sm:$0x3]  ;;  %s955_s23 = scalar_lea.vmem %s954_s11, 512 }
  0x82   : > { %p957_p8 = scmp.lt.s32.totalorder %s955_s23, %s949_s18 }
  0x84   : > { %p958_p12 = por %p957_p8, %p956_p0 }
  0x86   : > { %747 = vmatpush1.bf16.xpose.msra.mxu0 %v746_v28  ;;  %v406_v28 = vld [vmem:[%s1247_s17 + $0x1e8] sm:$0xff]  ;;  %p959_p4 = pnand %p958_p12, %p952_p5 }
  0x87   : > { %749 = vmatprep.subr.bf16.mxu0 %v748_v29  ;;  %v408_v29 = vld [vmem:[%s1247_s17 + $0x1f8] sm:$0xff] }
  0x88   : > { %v792_v31 = vpack.c.bf16 %v408_v29, %v406_v28 }
  0x8e   : > { %751 = vmatpush1.bf16.xpose.msra.mxu0 %v750_v34  ;;  %v794_v34 = vpack.c.bf16 %v407_v33, %v405_v32 }
  0x8f   : > { %753 = vmatprep.subr.bf16.mxu0 %v752_v35  ;;  %v343_v35 = vld [vmem:[#allocation4] sm:$0xff] }
  0x96   : > { %755 = vmatpush1.bf16.xpose.msra.mxu0 %v754_v40  ;;  %v488_v40 = vsub.s32 1, %v483_v37 }
  0x97   : > { %757 = vmatprep.subr.bf16.mxu0 %v756_v41  ;;  %v485_v41 = vrot.slane %v480_v39, %v484_v38 }
  0x98   : > { %v489_v42 = vrot.slane %v480_v39, %v488_v40 }
  0x9e   : > { %759 = vmatpush1.bf16.xpose.msra.mxu0 %v758_v46 }
  0x9f   : > { %761 = vmatprep.subr.bf16.mxu0 %v760_v47 }
  0xa6   : > { %763 = vmatpush1.bf16.xpose.msra.mxu0 %v762_v52 }
  0xa7   : > { %765 = vmatprep.subr.bf16.mxu0 %v764_v53  ;;  %v526_v53 = vld [vmem:[%s340_s19] sm:$0x3] }
  0xa8   : > { %v531_v54 = vrot.slane %v526_v53, %v484_v38  ;;  %v535_v56 = vrot.slane %v526_v53, %v488_v40 }
  0xae   : > { %767 = vmatpush1.bf16.xpose.msra.mxu0 %v766_v58 }
  0xaf   : > { %769 = vmatprep.subr.bf16.mxu0 %v768_v59 }
  0xb6   : > { %771 = vmatpush1.bf16.xpose.msra.mxu0 %v770_v0 }
  0xb7   : > { %773 = vmatprep.subr.bf16.mxu0 %v772_v1 }
  0xbe   : > { %775 = vmatpush1.bf16.xpose.msra.mxu0 %v774_v6 }
  0xbf   : > { %777 = vmatprep.subr.bf16.mxu0 %v776_v7 }
  0xc6   : > { %779 = vmatpush1.bf16.xpose.msra.mxu0 %v778_v12 }
  0xc7   : > { %781 = vmatprep.subr.bf16.mxu0 %v780_v13 }
  0xce   : > { %783 = vmatpush1.bf16.xpose.msra.mxu0 %v782_v18 }
  0xcf   : > { %785 = vmatprep.subr.bf16.mxu0 %v784_v19 }
  0xd6   : > { %787 = vmatpush1.bf16.xpose.msra.mxu0 %v786_v24 }
  0xd7   : > { %789 = vmatprep.subr.bf16.mxu0 %v788_v25 }
  0xde   : > { %791 = vmatpush1.bf16.xpose.msra.mxu0 %v790_v30 }
  0xdf   : > { %793 = vmatprep.subr.bf16.mxu0 %v792_v31 }
  0xe6   : > { %795 = vmatpush1.bf16.xpose.msra.mxu0 %v794_v34 }
  0xed   : > { %474 = vmatmul.mubr.f32.vlgmr.msra.gmra.mrb[0].mxu0 %v343_v35 }
  0xf0   : > { %v538_v55 = vpop.permute.xlu0 %537 }
  0xf1   : > { %vm539_vm0 = vcmp.eq.s32.totalorder %v531_v54, %v538_v55  ;;  %vm540_vm1 = vcmp.eq.s32.totalorder %v535_v56, %v538_v55 }
  0xf2   : > { %v722_v58 = vsel %vm539_vm0, 1.0, %v1045_v57  ;;  %v723_v62 = vsel %vm540_vm1, 1.0, %v1045_v57 }
  0xf3   : > { %v545_v1 = vmul.f32 0.9, %v722_v58  ;;  %v546_v9 = vmul.f32 0.9, %v723_v62 }
  0xf5   : > { %v547_v14 = vadd.f32 0.0001953125, %v545_v1  ;;  %v548_v18 = vadd.f32 0.0001953125, %v546_v9 }
 0x1c0   : > { %v475_v43 = vpop.f32.mrb[0].mxu0 }
 0x1c1   : > { %v492_v44 = vmul.f32 %v485_v41, %v475_v43  ;;  %v477_v45 = vpop.f32.mrb[1].mxu0 }
 0x1c2   : > { %v493_v46 = vmul.f32 %v489_v42, %v477_v45 }
 0x1c3   : > { %v494_v47 = vmul.f32 %v492_v44, %v492_v44  ;;  %v514_v7 = vmul.f32 0.87758255, %v492_v44  ;;  %v720_v13 = vadd.f32 -0.23971277, %v492_v44  ;;  %vm520_vm6 = vcmp.gt.f32.partialorder %v492_v44, -0.87758255 }
 0x1c4   : > { %v495_v48 = vmul.f32 %v493_v46, %v493_v46  ;;  %v515_v10 = vmul.f32 0.87758255, %v493_v46  ;;  %v721_v16 = vadd.f32 -0.23971277, %v493_v46  ;;  %vm521_vm7 = vcmp.gt.f32.partialorder %v493_v46, -0.87758255 }
 0x1c5   : > { %v496_v49 = vsub.f32 1.0, %v494_v47 }
 0x1c6   : > { %v497_v50 = vsub.f32 1.0, %v495_v48 }
 0x1c7   : > { %v498_v51 = vmax.f32 %v496_v49, 0.0 }
 0x1c8   : > { %v499_v52 = vmax.f32 %v497_v50, 0.0 }
 0x1c9   : > { %875 = vrsqrt.f32 %v498_v51  ;;  %vm502_vm2 = vcmp.eq.f32.partialorder %v498_v51, inf  ;;  %v505_v63 = vand.u32 2147483648, %v498_v51  ;;  %vm504_vm3 = vcmp.eq.f32.partialorder %v498_v51, 0.0 }
 0x1ca   : > { %877 = vrsqrt.f32 %v499_v52  ;;  %vm509_vm4 = vcmp.eq.f32.partialorder %v499_v52, inf  ;;  %v512_v3 = vand.u32 2147483648, %v499_v52  ;;  %vm511_vm5 = vcmp.eq.f32.partialorder %v499_v52, 0.0 }
 0x1d3   : > { %v876_v59 = vpop.eup %875 }
 0x1d4   : > { %v878_v60 = vpop.eup %877  ;;  %v501_v61 = vmul.f32 %v876_v59, %v498_v51 }
 0x1d5   : > { %v508_v0 = vmul.f32 %v878_v60, %v499_v52 }
 0x1d6   : > { %v503_v2 = vsel %vm502_vm2, %v498_v51, %v501_v61 }
 0x1d7   : > { %v506_v4 = vsel %vm504_vm3, %v505_v63, %v503_v2  ;;  %v510_v5 = vsel %vm509_vm4, %v499_v52, %v508_v0 }
 0x1d8   : > { %v513_v6 = vsel %vm511_vm5, %v512_v3, %v510_v5  ;;  %v516_v8 = vmul.f32 0.47942555, %v506_v4 }
 0x1d9   : > { %v517_v11 = vmul.f32 0.47942555, %v513_v6 }
 0x1da   : > { %v518_v12 = vsub.f32 %v514_v7, %v516_v8 }
 0x1db   : > { %v519_v15 = vsub.f32 %v515_v10, %v517_v11 }
 0x1dc   : > { %v524_v17 = vsel %vm520_vm6, %v518_v12, %v720_v13 }
 0x1dd   : > { %v525_v19 = vsel %vm521_vm7, %v519_v15, %v721_v16  ;;  %v549_v20 = vsub.f32 %v524_v17, %v492_v44 }
 0x1de   : > { %v550_v21 = vsub.f32 %v525_v19, %v493_v46 }
 0x1df   : > { %v551_v22 = vmul.f32 %v549_v20, %v547_v14 }
 0x1e0   : > { %v552_v23 = vmul.f32 %v550_v21, %v548_v18 }
 0x1e1   : > { %v553_v24 = vadd.f32 %v551_v22, %v492_v44 }
 0x1e2   : > { %v554_v25 = vadd.f32 %v552_v23, %v493_v46 }
 0x1e3   : > { %v555_v26 = vmul.f32 30.0, %v553_v24 }
 0x1e4   : > { %v556_v27 = vmul.f32 30.0, %v554_v25 }
 0x1e5   : > { %557 = vst [vmem:[%s326_s16] sm:$0xff] %v555_v26 }
 0x1e6   : > { %558 = vst [vmem:[%s326_s16 + $0x8] sm:$0xff] %v556_v27 }
 0x1e7   : > { %962 = shalt.err (!%p959_p4)
}
 0x1e8   : > { %s963_s8 = scalar_lea.hbm %s1332_s12, 256  ;;  %s967_s19 = scalar_lea.hbm %s1387_s6, 512 }
 0x1e9   : > { %p964_p7 = scmp.ne.s32.totalorder %s1332_s12, %s963_s8  ;;  %p968_p9 = scmp.lt.u32.totalorder %s1332_s12, %s1387_s6 }
 0x1ea   : > { %p969_p13 = scmp.lt.u32.totalorder %s967_s19, %s963_s8  ;;  %p971_p1 = scmp.lt.u32.totalorder %s963_s8, %s1332_s12 }
 0x1eb   : > { %p965_p11 = pnand %p964_p7, %p1409_p2 }
 0x1ec   : > { %p970_p10 = por %p969_p13, %p968_p9 }
 0x1ed   : > { %p966_p3 = pneg %p965_p11 }
 0x1ee   : > { %p972_p6 = por %p971_p1, %p970_p10 }
 0x1f0   : > { %p973_p5 = pnand %p972_p6, %p966_p3 }
 0x1f2   : > { %976 = shalt.err (!%p973_p5)
}
 0x1f3   : > { %802 = dma.vmem_to_hbm [thread:$0]  (%p1409_p2), %s1334_s22, 256, %s1332_s12, %s560_s15  }
 0x1f4 PF: > { %s588_s16 = sand.u32 1, %s1017_s26   ;;  %p1410_p0 = scmp.ne.s32.totalorder %s1398_s14, 0 }
 0x1f5   : > { %p1411_p8 = scmp.ge.s32.totalorder %s1037_s30, 2  ;;  %s589_s17 = scalar_lea.sflag [#allocation6], %s588_s16 }
 0x1f7   : > { %p813_p12 = pnand %p1411_p8, %p1410_p0 }
 0x1f9   : > { %1012 = dma.done.wait (!%p813_p12), %s589_s17, 256  }
 0x1fa   : > { %1014 = vsyncadd (!%p813_p12), %s589_s17, 4294967040  ;;  %s29_s30 = sadd.s32 1, %s1037_s30   ;;  %s1412_s26 = smov %s1021_s0 }
 0x1fb   : > { %p26_p4 = scmp.ge.s32.totalorder %s29_s30, 4   ;;  %s1413_s0 = smov %s1025_s27 }
 0x1fc   : > { %s1414_s27 = smov %s1204_s21  ;;  %s1415_s28 = smov %s1033_s29 }
 0x1fd   : > { %s1416_s29 = smov %s1418_s20  ;;  %28 = sbr.rel (!%p26_p4) target bundleno = 22 (0x16), region = 100 }
 0x204   :  { %594 = vsyncpa [#allocation5], 1 }
 0x205   :  { %596 = vsyncpa [#allocation5 + $0x1], 1 }
 0x206   :  { %597 = vsyncpa [#allocation8], 1 }
 0x207   :  { %599 = vsyncpa [#allocation8 + $0x1], 1 }
 0x208   :  { %600 = vsyncpa [#allocation6], 1 }
 0x209   :  { %602 = vsyncpa [#allocation6 + $0x1], 1 }

</bundles_post_ra>
